<compile_context>
chip_gen: v5e
topology: v5e:2x2
jax: 0.10.0
libtpu: 0.0.40
codegen_flags: <defaults>
</compile_context>

<pallas_src>
import numpy as np
import jax
import jax.numpy as jnp
from jax import lax
from jax.experimental import pallas as pl
from jax.experimental.pallas import tpu as pltpu


# ----------------------------------------------------------------------------
# Fused Pallas kernel: whole observation sequence, no grid
# ----------------------------------------------------------------------------
def _make_cnode_kernel(B, T, Nc, H, n1, n2, delta_t, corr_time):
    delta_t = float(delta_t)
    frac_step = float(delta_t) / float(corr_time)   # (k*dt)/corr_time per step
    Nc1 = Nc + 1                                    # augmented state width
    unroll1 = max(1, min(n1, 8))                    # capped unroll (review)
    unroll2 = max(1, min(n2, 8))

    def kernel(atwu_ref, small_ref, y_ref, m_ref, h_ref, pred_ref, unc_ref):
        # ---- hoisted, loop-invariant loads / broadcasts ---------------------
        ATWU = atwu_ref[...]                  # (Nc1, Nc1+2H) bf16 weight slab
        small = small_ref[...]                # (8, P) f32 packed small params
        Bv = small[0:1, :Nc1]                 # (1, Nc1); lane Nc is 0 (aug col)
        w2 = small[1:2, :H]                   # node layer-2 row
        b2 = small[2:3, 0:1]                  # node layer-2 bias
        ub2 = small[2:3, 1:2]                 # uncertainty layer-2 bias
        u2 = small[3:4, :H]                   # uncertainty layer-2 row

        Yv = y_ref[...]                       # (B, T)  observations
        Mv = m_ref[...]                       # (B, T)  mask

        BvB = jnp.broadcast_to(Bv, (B, Nc1))          # hoisted broadcasts
        BvB2 = jnp.broadcast_to(Bv, (2 * B, Nc1))
        lane_ids = lax.broadcasted_iota(jnp.int32, (B, T), 1)

        def mm(x):
            # Single bf16 MXU pass, f32 accumulation (review: cast at the dot).
            return jnp.dot(x.astype(jnp.bfloat16), ATWU,
                           preferred_element_type=jnp.float32)

        def node_val(z):
            # Node MLP from the fused matmul result; +b1 already folded in via
            # the bias row of the slab. W2 applied as a lane reduction.
            hmid = jnp.maximum(z[:, Nc1:Nc1 + H], 0.0)
            return jnp.sum(hmid * w2, axis=-1, keepdims=True) + b2

        # Augmented initial state: zeros with a constant-1 last column.
        st0 = (lax.broadcasted_iota(jnp.int32, (B, Nc1), 1) == Nc
               ).astype(jnp.float32)

        def obs_body(i, carry):
            st, pred_acc, unc_acc = carry
            sel = lane_ids == i                                   # (B, T)
            y = jnp.sum(jnp.where(sel, Yv, 0.0), axis=1, keepdims=True)  # (B,1)
            m = jnp.sum(jnp.where(sel, Mv, 0.0), axis=1, keepdims=True)  # (B,1)

            z0 = mm(st)

            # ---- n1 Euler steps of ode_fun: current_time -> t - corr_time --
            def euler_body(_, c):
                h, z = c
                g = node_val(z)                                   # node(h)
                h_new = h + delta_t * (z[:, :Nc1] + BvB * g)      # h@A.T+B*node
                return h_new, mm(h_new)

            h_pre, z_pre = lax.fori_loop(0, n1, euler_body, (st, z0),
                                         unroll=unroll1)

            pred_pre = node_val(z_pre)        # prediction at t - corr_time
            dlt = y - pred_pre                # correction drive delta

            # ---- n2 steps: free chain + correction chain stacked (2B, Nc1) --
            sta = jnp.concatenate([h_pre, h_pre], axis=0)         # once per obs
            zsa = jnp.concatenate([z_pre, z_pre], axis=0)

            def stacked_body(k, c):
                s, zs = c
                g_up = node_val(zs)[:B]                           # ode_fun drive
                y_est = pred_pre + (k * jnp.float32(frac_step)) * dlt
                g_eff = jnp.concatenate([g_up, y_est], axis=0)    # (2B, 1) only
                s_new = s + delta_t * (zs[:, :Nc1] + BvB2 * g_eff)
                return s_new, mm(s_new)

            st_end, zs_end = lax.fori_loop(0, n2, stacked_body, (sta, zsa),
                                           unroll=unroll2)

            z_end = zs_end[:B]                # uncorrected state's fused matmul
            pred_end = node_val(z_end)        # prediction at t (g_out[2])
            uh = jnp.maximum(z_end[:, Nc1 + H:], 0.0)             # +ub1 folded
            unc = jax.nn.sigmoid(jnp.sum(uh * u2, axis=-1, keepdims=True) + ub2)

            h_end = st_end[:B]                # h_proj[-1] (uncorrected)
            h_upd = st_end[B:]                # h_update[-1] (corrected)
            st_new = h_upd * m + h_end * (1.0 - m)   # masked update (col Nc==1)

            pred_acc = jnp.where(sel, pred_end, pred_acc)
            unc_acc = jnp.where(sel, unc, unc_acc)
            return st_new, pred_acc, unc_acc

        st_fin, preds, uncs = lax.fori_loop(
            0, T, obs_body,
            (st0,
             jnp.zeros((B, T), jnp.float32),
             jnp.zeros((B, T), jnp.float32)))

        h_ref[...] = st_fin[:, :Nc]           # strip the constant-1 column
        pred_ref[...] = preds
        unc_ref[...] = uncs

    return kernel


def make_cnode_forward(B, T, Nc, H, n1, n2, delta_t, corr_time):
    kernel = _make_cnode_kernel(B, T, Nc, H, n1, n2, delta_t, corr_time)

    def vmem():
        return pl.BlockSpec(memory_space=pltpu.MemorySpace.VMEM)

    call = pl.pallas_call(
        kernel,
        out_shape=(jax.ShapeDtypeStruct((B, Nc), jnp.float32),
                   jax.ShapeDtypeStruct((B, T), jnp.float32),
                   jax.ShapeDtypeStruct((B, T), jnp.float32)),
        in_specs=[vmem(), vmem(), vmem(), vmem()],
        out_specs=(vmem(), vmem(), vmem()),
        compiler_params=pltpu.CompilerParams(
            vmem_limit_bytes=32 * 1024 * 1024),   # explicit VMEM budget
    )

    def fwd(packed, Y, mask):
        Yt = Y.astype(jnp.float32)[:, :, 0]          # (B, T) lane-dense
        Mt = mask.astype(jnp.float32)                # (B, T)
        h, preds, uncs = call(packed["ATWU"], packed["SMALL"], Yt, Mt)
        return preds[:, :, None], h, uncs[:, :, None]

    return jax.jit(fwd)


# ----------------------------------------------------------------------------
# Parameter construction (deterministic, mirrors __init__)
# ----------------------------------------------------------------------------
def init_params(key, Nc, hidden_dim, input_dim, Delta, scale=0.1):
    n = np.arange(Nc)
    sq = np.sqrt(2.0 * n + 1.0)
    N_, K_ = np.meshgrid(n, n, indexing="ij")
    sign = np.where(K_ <= N_, 1.0,
                    np.where((N_ - K_) % 2 == 0, 1.0, -1.0))   # (-1)**(n-k), k>n
    A = -(1.0 / Delta) * np.outer(sq, sq) * sign
    Bvec = (1.0 / Delta) * sq

    ks = jax.random.split(key, 8)
    W1 = scale * jax.random.normal(ks[0], (hidden_dim, Nc), jnp.float32)
    b1 = scale * jax.random.normal(ks[1], (hidden_dim,), jnp.float32)
    W2 = scale * jax.random.normal(ks[2], (input_dim, hidden_dim), jnp.float32)
    b2 = scale * jax.random.normal(ks[3], (input_dim,), jnp.float32)
    U1 = scale * jax.random.normal(ks[4], (hidden_dim, Nc), jnp.float32)
    ub1 = scale * jax.random.normal(ks[5], (hidden_dim,), jnp.float32)
    U2 = scale * jax.random.normal(ks[6], (1, hidden_dim), jnp.float32)
    ub2 = scale * jax.random.normal(ks[7], (1,), jnp.float32)

    return dict(
        AT=jnp.asarray(A.T, jnp.float32),          # kernel computes cn @ A.T
        Bv=jnp.asarray(Bvec, jnp.float32)[None, :],
        W1t=W1.T, b1=b1[None, :], W2t=W2.T, b2=b2[None, :],
        U1t=U1.T, ub1=ub1[None, :], U2t=U2.T, ub2=ub2[None, :],
    )


def pack_params(p):
    Nc = p["AT"].shape[0]
    H = p["b1"].shape[-1]
    # Fused, bias-augmented weight slab for the single per-step MXU push:
    #   [ A.T | 0 | W1.T | U1.T ]
    #   [  0  | 0 |  b1  |  ub1 ]    shape (Nc+1, Nc+1+2H), bf16.
    top = jnp.concatenate(
        [p["AT"], jnp.zeros((Nc, 1), jnp.float32), p["W1t"], p["U1t"]], axis=1)
    bot = jnp.concatenate(
        [jnp.zeros((1, Nc + 1), jnp.float32), p["b1"], p["ub1"]], axis=1)
    atwu = jnp.concatenate([top, bot], axis=0).astype(jnp.bfloat16)

    # Remaining tiny params packed into one (8, P) slab, sliced in-kernel.
    P = max(Nc + 1, H, 2)
    small = jnp.zeros((8, P), jnp.float32)
    small = small.at[0, :Nc].set(p["Bv"][0])       # Bv (aug lane Nc stays 0)
    small = small.at[1, :H].set(p["W2t"][:, 0])    # W2 row
    small = small.at[2, 0].set(p["b2"][0, 0])      # b2
    small = small.at[2, 1].set(p["ub2"][0, 0])     # ub2
    small = small.at[3, :H].set(p["U2t"][:, 0])    # U2 row
    return dict(ATWU=atwu, SMALL=small)


# ----------------------------------------------------------------------------
# Full forward (single fused pallas_call)
# ----------------------------------------------------------------------------
def cnode_forward(times, Y, mask, params, corr_time, delta_t):
    B, T, D = Y.shape
    assert D == 1  # TODO(synk): generalize W2 lane-reduction to input_dim > 1
    Nc = params["AT"].shape[0]
    H = params["b1"].shape[-1]
    n2 = int(round(corr_time / delta_t))
    seg = float(times[0]) - 0.0
    n1 = int(round(seg / delta_t)) - n2
    cur = 0.0
    for t in times:   # equally spaced, aligned with the Euler grid
        assert abs((float(t) - cur) - seg) < 1e-6, "equally spaced times assumed"
        cur = float(t)

    fwd = make_cnode_forward(B, T, Nc, H, n1, n2, delta_t, corr_time)
    out_pred, h, out_unc = fwd(pack_params(params), Y, mask)
    out_times = jnp.asarray([float(t) for t in times], jnp.float32)
    return out_pred, h, out_times, out_unc, None


# ----------------------------------------------------------------------------
# Plain-JAX reference (same math, no Pallas) for a sanity check
# ----------------------------------------------------------------------------
def _ref_forward(times, Y, mask, params, corr_time, delta_t):
    AT, Bv = params["AT"], params["Bv"]

    def node(cn):
        hm = jnp.maximum(cn @ params["W1t"] + params["b1"], 0.0)
        return hm @ params["W2t"] + params["b2"]

    def f(cn):
        return cn @ AT + Bv * node(cn)

    B, T, D = Y.shape
    Nc = AT.shape[0]
    n2 = int(round(corr_time / delta_t))
    n1 = int(round(float(times[0]) / delta_t)) - n2
    h = jnp.zeros((B, Nc), jnp.float32)
    preds, uncs = [], []
    for i_t in range(T):
        cn = h
        for _ in range(n1):
            cn = cn + delta_t * f(cn)
        h_pre = cn
        for _ in range(n2):
            cn = cn + delta_t * f(cn)
        h_end = cn
        pred_pre = node(h_pre)
        pred_end = node(h_end)
        uh = jnp.maximum(h_end @ params["U1t"] + params["ub1"], 0.0)
        unc = jax.nn.sigmoid(uh @ params["U2t"] + params["ub2"])
        y_t = Y[:, i_t, :]
        cn = h_pre
        for k in range(n2):
            frac = (k * delta_t) / corr_time
            y_est = pred_pre + frac * (y_t - pred_pre)
            cn = cn + delta_t * (cn @ AT + Bv * y_est)
        m_t = mask[:, i_t][:, None]
        h = cn * m_t + h_end * (1.0 - m_t)
        preds.append(pred_end)
        uncs.append(unc)
    return (jnp.stack(preds, axis=1), h,
            jnp.asarray(times, jnp.float32), jnp.stack(uncs, axis=1), None)


if __name__ == "__main__":
    key = jax.random.PRNGKey(0)
    Bsz, T, D = 4, 8, 1                 # batch, #observation times, input_dim
    Nc = hidden_dim = 16                # module requires Nc == hidden_dim
    Delta, corr_time, delta_t = 8.0, 0.1, 0.05
    times = [0.5 * (i + 1) for i in range(T)]      # aligned with the Euler grid

    kp, ky, km = jax.random.split(key, 3)
    params = init_params(kp, Nc, hidden_dim, D, Delta)
    Y = jax.random.normal(ky, (Bsz, T, D), jnp.float32)
    mask = (jax.random.uniform(km, (Bsz, T)) > 0.3).astype(jnp.float32)

    out_pred, h_final, out_times, out_unc, _ = cnode_forward(
        times, Y, mask, params, corr_time, delta_t)
    jax.block_until_ready((out_pred, h_final, out_times, out_unc))

    ref_pred, ref_h, ref_times, ref_unc, _ = _ref_forward(
        times, Y, mask, params, corr_time, delta_t)
    np.testing.assert_allclose(np.asarray(out_pred), np.asarray(ref_pred),
                               rtol=2e-2, atol=2e-2)
    np.testing.assert_allclose(np.asarray(h_final), np.asarray(ref_h),
                               rtol=2e-2, atol=2e-2)
    np.testing.assert_allclose(np.asarray(out_unc), np.asarray(ref_unc),
                               rtol=2e-2, atol=2e-2)
    np.testing.assert_allclose(np.asarray(out_times), np.asarray(ref_times),
                               rtol=1e-6, atol=1e-6)

    print("KERNEL_OK")
</pallas_src>

<mosaic_0001>
module attributes {stable_mosaic.version = 11 : i64} {
  func.func @kernel(%arg0: memref<17x49xbf16, #tpu.memory_space<vmem>>, %arg1: memref<8x17xf32, #tpu.memory_space<vmem>>, %arg2: memref<4x8xf32, #tpu.memory_space<vmem>>, %arg3: memref<4x8xf32, #tpu.memory_space<vmem>>, %arg4: memref<4x16xf32, #tpu.memory_space<vmem>>, %arg5: memref<4x8xf32, #tpu.memory_space<vmem>>, %arg6: memref<4x8xf32, #tpu.memory_space<vmem>>) attributes {dimension_semantics = [], scalar_prefetch = 0 : i64, scratch_operands = 0 : i64, tpu.core_type = #tpu.core_type<tc>} {
    %c0 = arith.constant 0 : index
    %c0_0 = arith.constant 0 : index
    %0 = vector.load %arg0[%c0, %c0_0] : memref<17x49xbf16, #tpu.memory_space<vmem>>, vector<17x49xbf16>
    %c0_1 = arith.constant 0 : index
    %c0_2 = arith.constant 0 : index
    %1 = vector.load %arg1[%c0_1, %c0_2] : memref<8x17xf32, #tpu.memory_space<vmem>>, vector<8x17xf32>
    %2 = vector.extract_strided_slice %1 {offsets = [0, 0], sizes = [1, 17], strides = [1, 1]} : vector<8x17xf32> to vector<1x17xf32>
    %3 = vector.extract_strided_slice %1 {offsets = [1, 0], sizes = [1, 16], strides = [1, 1]} : vector<8x17xf32> to vector<1x16xf32>
    %4 = vector.extract_strided_slice %1 {offsets = [2, 0], sizes = [1, 1], strides = [1, 1]} : vector<8x17xf32> to vector<1x1xf32>
    %5 = vector.extract_strided_slice %1 {offsets = [2, 1], sizes = [1, 1], strides = [1, 1]} : vector<8x17xf32> to vector<1x1xf32>
    %6 = vector.extract_strided_slice %1 {offsets = [3, 0], sizes = [1, 16], strides = [1, 1]} : vector<8x17xf32> to vector<1x16xf32>
    %c0_3 = arith.constant 0 : index
    %c0_4 = arith.constant 0 : index
    %7 = vector.load %arg2[%c0_3, %c0_4] : memref<4x8xf32, #tpu.memory_space<vmem>>, vector<4x8xf32>
    %c0_5 = arith.constant 0 : index
    %c0_6 = arith.constant 0 : index
    %8 = vector.load %arg3[%c0_5, %c0_6] : memref<4x8xf32, #tpu.memory_space<vmem>>, vector<4x8xf32>
    %9 = vector.shape_cast %2 : vector<1x17xf32> to vector<1x17xf32>
    %10 = vector.broadcast %9 : vector<1x17xf32> to vector<4x17xf32>
    %11 = vector.shape_cast %2 : vector<1x17xf32> to vector<1x17xf32>
    %12 = vector.broadcast %11 : vector<1x17xf32> to vector<8x17xf32>
    %13 = tpu.iota {dimensions = array<i32: 1>} : vector<4x8xi32>
    %14 = tpu.iota {dimensions = array<i32: 1>} : vector<4x17xi32>
    %c16_i32 = arith.constant 16 : i32
    %15 = vector.broadcast %c16_i32 : i32 to vector<4x17xi32>
    %16 = arith.cmpi eq, %14, %15 : vector<4x17xi32>
    %17 = arith.extui %16 : vector<4x17xi1> to vector<4x17xi32>
    %18 = arith.sitofp %17 : vector<4x17xi32> to vector<4x17xf32>
    %cst = arith.constant 0.000000e+00 : f32
    %19 = vector.broadcast %cst : f32 to vector<4x8xf32>
    %cst_7 = arith.constant 0.000000e+00 : f32
    %20 = vector.broadcast %cst_7 : f32 to vector<4x8xf32>
    %c0_i32 = arith.constant 0 : i32
    %c8_i32 = arith.constant 8 : i32
    %21 = arith.addi %c0_i32, %c8_i32 : i32
    %c1_i32 = arith.constant 1 : i32
    %22:3 = scf.for %arg7 = %c0_i32 to %21 step %c1_i32 iter_args(%arg8 = %18, %arg9 = %19, %arg10 = %20) -> (vector<4x17xf32>, vector<4x8xf32>, vector<4x8xf32>)  : i32 {
      %27 = vector.broadcast %arg7 : i32 to vector<4x8xi32>
      %28 = arith.cmpi eq, %13, %27 : vector<4x8xi32>
      %cst_15 = arith.constant 0.000000e+00 : f32
      %29 = vector.broadcast %cst_15 : f32 to vector<4x8xf32>
      %30 = arith.select %28, %7, %29 : vector<4x8xi1>, vector<4x8xf32>
      %cst_16 = arith.constant dense<0.000000e+00> : vector<4xf32>
      %31 = vector.multi_reduction <add>, %30, %cst_16 [1] : vector<4x8xf32> to vector<4xf32>
      %32 = vector.shape_cast %31 : vector<4xf32> to vector<4x1xf32>
      %cst_17 = arith.constant 0.000000e+00 : f32
      %33 = vector.broadcast %cst_17 : f32 to vector<4x8xf32>
      %34 = arith.select %28, %8, %33 : vector<4x8xi1>, vector<4x8xf32>
      %cst_18 = arith.constant dense<0.000000e+00> : vector<4xf32>
      %35 = vector.multi_reduction <add>, %34, %cst_18 [1] : vector<4x8xf32> to vector<4xf32>
      %36 = vector.shape_cast %35 : vector<4xf32> to vector<4x1xf32>
      %37 = arith.truncf %arg8 : vector<4x17xf32> to vector<4x17xbf16>
      %cst_19 = arith.constant dense<0.000000e+00> : vector<4x49xf32>
      %38 = tpu.matmul %37, %0, %cst_19 {dimension_numbers = #tpu.dot_dimension_numbers<[1], [0], [0], [1], [0, 0, 1, 1], [], []>} : vector<4x17xbf16>, vector<17x49xbf16>, vector<4x49xf32> -> vector<4x49xf32>
      %c0_i32_20 = arith.constant 0 : i32
      %39 = vector.extract_strided_slice %38 {offsets = [0, 17], sizes = [4, 16], strides = [1, 1]} : vector<4x49xf32> to vector<4x16xf32>
      %cst_21 = arith.constant 0.000000e+00 : f32
      %40 = vector.broadcast %cst_21 : f32 to vector<4x16xf32>
      %41 = arith.maximumf %39, %40 : vector<4x16xf32>
      %42 = vector.broadcast %3 : vector<1x16xf32> to vector<4x16xf32>
      %43 = arith.mulf %41, %42 : vector<4x16xf32>
      %cst_22 = arith.constant dense<0.000000e+00> : vector<4xf32>
      %44 = vector.multi_reduction <add>, %43, %cst_22 [1] : vector<4x16xf32> to vector<4xf32>
      %45 = vector.shape_cast %44 : vector<4xf32> to vector<4x1xf32>
      %46 = vector.broadcast %4 : vector<1x1xf32> to vector<4x1xf32>
      %47 = arith.addf %45, %46 : vector<4x1xf32>
      %48 = vector.extract_strided_slice %38 {offsets = [0, 0], sizes = [4, 17], strides = [1, 1]} : vector<4x49xf32> to vector<4x17xf32>
      %49 = vector.broadcast %47 : vector<4x1xf32> to vector<4x17xf32>
      %50 = arith.mulf %10, %49 : vector<4x17xf32>
      %51 = arith.addf %48, %50 : vector<4x17xf32>
      %cst_23 = arith.constant 5.000000e-02 : f32
      %52 = vector.broadcast %cst_23 : f32 to vector<4x17xf32>
      %53 = arith.mulf %52, %51 : vector<4x17xf32>
      %54 = arith.addf %arg8, %53 : vector<4x17xf32>
      %55 = arith.truncf %54 : vector<4x17xf32> to vector<4x17xbf16>
      %cst_24 = arith.constant dense<0.000000e+00> : vector<4x49xf32>
      %56 = tpu.matmul %55, %0, %cst_24 {dimension_numbers = #tpu.dot_dimension_numbers<[1], [0], [0], [1], [0, 0, 1, 1], [], []>} : vector<4x17xbf16>, vector<17x49xbf16>, vector<4x49xf32> -> vector<4x49xf32>
      %c1_i32_25 = arith.constant 1 : i32
      %57 = vector.extract_strided_slice %56 {offsets = [0, 17], sizes = [4, 16], strides = [1, 1]} : vector<4x49xf32> to vector<4x16xf32>
      %cst_26 = arith.constant 0.000000e+00 : f32
      %58 = vector.broadcast %cst_26 : f32 to vector<4x16xf32>
      %59 = arith.maximumf %57, %58 : vector<4x16xf32>
      %60 = vector.broadcast %3 : vector<1x16xf32> to vector<4x16xf32>
      %61 = arith.mulf %59, %60 : vector<4x16xf32>
      %cst_27 = arith.constant dense<0.000000e+00> : vector<4xf32>
      %62 = vector.multi_reduction <add>, %61, %cst_27 [1] : vector<4x16xf32> to vector<4xf32>
      %63 = vector.shape_cast %62 : vector<4xf32> to vector<4x1xf32>
      %64 = vector.broadcast %4 : vector<1x1xf32> to vector<4x1xf32>
      %65 = arith.addf %63, %64 : vector<4x1xf32>
      %66 = vector.extract_strided_slice %56 {offsets = [0, 0], sizes = [4, 17], strides = [1, 1]} : vector<4x49xf32> to vector<4x17xf32>
      %67 = vector.broadcast %65 : vector<4x1xf32> to vector<4x17xf32>
      %68 = arith.mulf %10, %67 : vector<4x17xf32>
      %69 = arith.addf %66, %68 : vector<4x17xf32>
      %cst_28 = arith.constant 5.000000e-02 : f32
      %70 = vector.broadcast %cst_28 : f32 to vector<4x17xf32>
      %71 = arith.mulf %70, %69 : vector<4x17xf32>
      %72 = arith.addf %54, %71 : vector<4x17xf32>
      %73 = arith.truncf %72 : vector<4x17xf32> to vector<4x17xbf16>
      %cst_29 = arith.constant dense<0.000000e+00> : vector<4x49xf32>
      %74 = tpu.matmul %73, %0, %cst_29 {dimension_numbers = #tpu.dot_dimension_numbers<[1], [0], [0], [1], [0, 0, 1, 1], [], []>} : vector<4x17xbf16>, vector<17x49xbf16>, vector<4x49xf32> -> vector<4x49xf32>
      %c2_i32 = arith.constant 2 : i32
      %75 = vector.extract_strided_slice %74 {offsets = [0, 17], sizes = [4, 16], strides = [1, 1]} : vector<4x49xf32> to vector<4x16xf32>
      %cst_30 = arith.constant 0.000000e+00 : f32
      %76 = vector.broadcast %cst_30 : f32 to vector<4x16xf32>
      %77 = arith.maximumf %75, %76 : vector<4x16xf32>
      %78 = vector.broadcast %3 : vector<1x16xf32> to vector<4x16xf32>
      %79 = arith.mulf %77, %78 : vector<4x16xf32>
      %cst_31 = arith.constant dense<0.000000e+00> : vector<4xf32>
      %80 = vector.multi_reduction <add>, %79, %cst_31 [1] : vector<4x16xf32> to vector<4xf32>
      %81 = vector.shape_cast %80 : vector<4xf32> to vector<4x1xf32>
      %82 = vector.broadcast %4 : vector<1x1xf32> to vector<4x1xf32>
      %83 = arith.addf %81, %82 : vector<4x1xf32>
      %84 = vector.extract_strided_slice %74 {offsets = [0, 0], sizes = [4, 17], strides = [1, 1]} : vector<4x49xf32> to vector<4x17xf32>
      %85 = vector.broadcast %83 : vector<4x1xf32> to vector<4x17xf32>
      %86 = arith.mulf %10, %85 : vector<4x17xf32>
      %87 = arith.addf %84, %86 : vector<4x17xf32>
      %cst_32 = arith.constant 5.000000e-02 : f32
      %88 = vector.broadcast %cst_32 : f32 to vector<4x17xf32>
      %89 = arith.mulf %88, %87 : vector<4x17xf32>
      %90 = arith.addf %72, %89 : vector<4x17xf32>
      %91 = arith.truncf %90 : vector<4x17xf32> to vector<4x17xbf16>
      %cst_33 = arith.constant dense<0.000000e+00> : vector<4x49xf32>
      %92 = tpu.matmul %91, %0, %cst_33 {dimension_numbers = #tpu.dot_dimension_numbers<[1], [0], [0], [1], [0, 0, 1, 1], [], []>} : vector<4x17xbf16>, vector<17x49xbf16>, vector<4x49xf32> -> vector<4x49xf32>
      %c3_i32 = arith.constant 3 : i32
      %93 = vector.extract_strided_slice %92 {offsets = [0, 17], sizes = [4, 16], strides = [1, 1]} : vector<4x49xf32> to vector<4x16xf32>
      %cst_34 = arith.constant 0.000000e+00 : f32
      %94 = vector.broadcast %cst_34 : f32 to vector<4x16xf32>
      %95 = arith.maximumf %93, %94 : vector<4x16xf32>
      %96 = vector.broadcast %3 : vector<1x16xf32> to vector<4x16xf32>
      %97 = arith.mulf %95, %96 : vector<4x16xf32>
      %cst_35 = arith.constant dense<0.000000e+00> : vector<4xf32>
      %98 = vector.multi_reduction <add>, %97, %cst_35 [1] : vector<4x16xf32> to vector<4xf32>
      %99 = vector.shape_cast %98 : vector<4xf32> to vector<4x1xf32>
      %100 = vector.broadcast %4 : vector<1x1xf32> to vector<4x1xf32>
      %101 = arith.addf %99, %100 : vector<4x1xf32>
      %102 = vector.extract_strided_slice %92 {offsets = [0, 0], sizes = [4, 17], strides = [1, 1]} : vector<4x49xf32> to vector<4x17xf32>
      %103 = vector.broadcast %101 : vector<4x1xf32> to vector<4x17xf32>
      %104 = arith.mulf %10, %103 : vector<4x17xf32>
      %105 = arith.addf %102, %104 : vector<4x17xf32>
      %cst_36 = arith.constant 5.000000e-02 : f32
      %106 = vector.broadcast %cst_36 : f32 to vector<4x17xf32>
      %107 = arith.mulf %106, %105 : vector<4x17xf32>
      %108 = arith.addf %90, %107 : vector<4x17xf32>
      %109 = arith.truncf %108 : vector<4x17xf32> to vector<4x17xbf16>
      %cst_37 = arith.constant dense<0.000000e+00> : vector<4x49xf32>
      %110 = tpu.matmul %109, %0, %cst_37 {dimension_numbers = #tpu.dot_dimension_numbers<[1], [0], [0], [1], [0, 0, 1, 1], [], []>} : vector<4x17xbf16>, vector<17x49xbf16>, vector<4x49xf32> -> vector<4x49xf32>
      %c4_i32 = arith.constant 4 : i32
      %111 = vector.extract_strided_slice %110 {offsets = [0, 17], sizes = [4, 16], strides = [1, 1]} : vector<4x49xf32> to vector<4x16xf32>
      %cst_38 = arith.constant 0.000000e+00 : f32
      %112 = vector.broadcast %cst_38 : f32 to vector<4x16xf32>
      %113 = arith.maximumf %111, %112 : vector<4x16xf32>
      %114 = vector.broadcast %3 : vector<1x16xf32> to vector<4x16xf32>
      %115 = arith.mulf %113, %114 : vector<4x16xf32>
      %cst_39 = arith.constant dense<0.000000e+00> : vector<4xf32>
      %116 = vector.multi_reduction <add>, %115, %cst_39 [1] : vector<4x16xf32> to vector<4xf32>
      %117 = vector.shape_cast %116 : vector<4xf32> to vector<4x1xf32>
      %118 = vector.broadcast %4 : vector<1x1xf32> to vector<4x1xf32>
      %119 = arith.addf %117, %118 : vector<4x1xf32>
      %120 = vector.extract_strided_slice %110 {offsets = [0, 0], sizes = [4, 17], strides = [1, 1]} : vector<4x49xf32> to vector<4x17xf32>
      %121 = vector.broadcast %119 : vector<4x1xf32> to vector<4x17xf32>
      %122 = arith.mulf %10, %121 : vector<4x17xf32>
      %123 = arith.addf %120, %122 : vector<4x17xf32>
      %cst_40 = arith.constant 5.000000e-02 : f32
      %124 = vector.broadcast %cst_40 : f32 to vector<4x17xf32>
      %125 = arith.mulf %124, %123 : vector<4x17xf32>
      %126 = arith.addf %108, %125 : vector<4x17xf32>
      %127 = arith.truncf %126 : vector<4x17xf32> to vector<4x17xbf16>
      %cst_41 = arith.constant dense<0.000000e+00> : vector<4x49xf32>
      %128 = tpu.matmul %127, %0, %cst_41 {dimension_numbers = #tpu.dot_dimension_numbers<[1], [0], [0], [1], [0, 0, 1, 1], [], []>} : vector<4x17xbf16>, vector<17x49xbf16>, vector<4x49xf32> -> vector<4x49xf32>
      %c5_i32 = arith.constant 5 : i32
      %129 = vector.extract_strided_slice %128 {offsets = [0, 17], sizes = [4, 16], strides = [1, 1]} : vector<4x49xf32> to vector<4x16xf32>
      %cst_42 = arith.constant 0.000000e+00 : f32
      %130 = vector.broadcast %cst_42 : f32 to vector<4x16xf32>
      %131 = arith.maximumf %129, %130 : vector<4x16xf32>
      %132 = vector.broadcast %3 : vector<1x16xf32> to vector<4x16xf32>
      %133 = arith.mulf %131, %132 : vector<4x16xf32>
      %cst_43 = arith.constant dense<0.000000e+00> : vector<4xf32>
      %134 = vector.multi_reduction <add>, %133, %cst_43 [1] : vector<4x16xf32> to vector<4xf32>
      %135 = vector.shape_cast %134 : vector<4xf32> to vector<4x1xf32>
      %136 = vector.broadcast %4 : vector<1x1xf32> to vector<4x1xf32>
      %137 = arith.addf %135, %136 : vector<4x1xf32>
      %138 = vector.extract_strided_slice %128 {offsets = [0, 0], sizes = [4, 17], strides = [1, 1]} : vector<4x49xf32> to vector<4x17xf32>
      %139 = vector.broadcast %137 : vector<4x1xf32> to vector<4x17xf32>
      %140 = arith.mulf %10, %139 : vector<4x17xf32>
      %141 = arith.addf %138, %140 : vector<4x17xf32>
      %cst_44 = arith.constant 5.000000e-02 : f32
      %142 = vector.broadcast %cst_44 : f32 to vector<4x17xf32>
      %143 = arith.mulf %142, %141 : vector<4x17xf32>
      %144 = arith.addf %126, %143 : vector<4x17xf32>
      %145 = arith.truncf %144 : vector<4x17xf32> to vector<4x17xbf16>
      %cst_45 = arith.constant dense<0.000000e+00> : vector<4x49xf32>
      %146 = tpu.matmul %145, %0, %cst_45 {dimension_numbers = #tpu.dot_dimension_numbers<[1], [0], [0], [1], [0, 0, 1, 1], [], []>} : vector<4x17xbf16>, vector<17x49xbf16>, vector<4x49xf32> -> vector<4x49xf32>
      %c6_i32 = arith.constant 6 : i32
      %147 = vector.extract_strided_slice %146 {offsets = [0, 17], sizes = [4, 16], strides = [1, 1]} : vector<4x49xf32> to vector<4x16xf32>
      %cst_46 = arith.constant 0.000000e+00 : f32
      %148 = vector.broadcast %cst_46 : f32 to vector<4x16xf32>
      %149 = arith.maximumf %147, %148 : vector<4x16xf32>
      %150 = vector.broadcast %3 : vector<1x16xf32> to vector<4x16xf32>
      %151 = arith.mulf %149, %150 : vector<4x16xf32>
      %cst_47 = arith.constant dense<0.000000e+00> : vector<4xf32>
      %152 = vector.multi_reduction <add>, %151, %cst_47 [1] : vector<4x16xf32> to vector<4xf32>
      %153 = vector.shape_cast %152 : vector<4xf32> to vector<4x1xf32>
      %154 = vector.broadcast %4 : vector<1x1xf32> to vector<4x1xf32>
      %155 = arith.addf %153, %154 : vector<4x1xf32>
      %156 = vector.extract_strided_slice %146 {offsets = [0, 0], sizes = [4, 17], strides = [1, 1]} : vector<4x49xf32> to vector<4x17xf32>
      %157 = vector.broadcast %155 : vector<4x1xf32> to vector<4x17xf32>
      %158 = arith.mulf %10, %157 : vector<4x17xf32>
      %159 = arith.addf %156, %158 : vector<4x17xf32>
      %cst_48 = arith.constant 5.000000e-02 : f32
      %160 = vector.broadcast %cst_48 : f32 to vector<4x17xf32>
      %161 = arith.mulf %160, %159 : vector<4x17xf32>
      %162 = arith.addf %144, %161 : vector<4x17xf32>
      %163 = arith.truncf %162 : vector<4x17xf32> to vector<4x17xbf16>
      %cst_49 = arith.constant dense<0.000000e+00> : vector<4x49xf32>
      %164 = tpu.matmul %163, %0, %cst_49 {dimension_numbers = #tpu.dot_dimension_numbers<[1], [0], [0], [1], [0, 0, 1, 1], [], []>} : vector<4x17xbf16>, vector<17x49xbf16>, vector<4x49xf32> -> vector<4x49xf32>
      %c7_i32 = arith.constant 7 : i32
      %165 = vector.extract_strided_slice %164 {offsets = [0, 17], sizes = [4, 16], strides = [1, 1]} : vector<4x49xf32> to vector<4x16xf32>
      %cst_50 = arith.constant 0.000000e+00 : f32
      %166 = vector.broadcast %cst_50 : f32 to vector<4x16xf32>
      %167 = arith.maximumf %165, %166 : vector<4x16xf32>
      %168 = vector.broadcast %3 : vector<1x16xf32> to vector<4x16xf32>
      %169 = arith.mulf %167, %168 : vector<4x16xf32>
      %cst_51 = arith.constant dense<0.000000e+00> : vector<4xf32>
      %170 = vector.multi_reduction <add>, %169, %cst_51 [1] : vector<4x16xf32> to vector<4xf32>
      %171 = vector.shape_cast %170 : vector<4xf32> to vector<4x1xf32>
      %172 = vector.broadcast %4 : vector<1x1xf32> to vector<4x1xf32>
      %173 = arith.addf %171, %172 : vector<4x1xf32>
      %174 = vector.extract_strided_slice %164 {offsets = [0, 0], sizes = [4, 17], strides = [1, 1]} : vector<4x49xf32> to vector<4x17xf32>
      %175 = vector.broadcast %173 : vector<4x1xf32> to vector<4x17xf32>
      %176 = arith.mulf %10, %175 : vector<4x17xf32>
      %177 = arith.addf %174, %176 : vector<4x17xf32>
      %cst_52 = arith.constant 5.000000e-02 : f32
      %178 = vector.broadcast %cst_52 : f32 to vector<4x17xf32>
      %179 = arith.mulf %178, %177 : vector<4x17xf32>
      %180 = arith.addf %162, %179 : vector<4x17xf32>
      %181 = arith.truncf %180 : vector<4x17xf32> to vector<4x17xbf16>
      %cst_53 = arith.constant dense<0.000000e+00> : vector<4x49xf32>
      %182 = tpu.matmul %181, %0, %cst_53 {dimension_numbers = #tpu.dot_dimension_numbers<[1], [0], [0], [1], [0, 0, 1, 1], [], []>} : vector<4x17xbf16>, vector<17x49xbf16>, vector<4x49xf32> -> vector<4x49xf32>
      %183 = vector.extract_strided_slice %182 {offsets = [0, 17], sizes = [4, 16], strides = [1, 1]} : vector<4x49xf32> to vector<4x16xf32>
      %cst_54 = arith.constant 0.000000e+00 : f32
      %184 = vector.broadcast %cst_54 : f32 to vector<4x16xf32>
      %185 = arith.maximumf %183, %184 : vector<4x16xf32>
      %186 = vector.broadcast %3 : vector<1x16xf32> to vector<4x16xf32>
      %187 = arith.mulf %185, %186 : vector<4x16xf32>
      %cst_55 = arith.constant dense<0.000000e+00> : vector<4xf32>
      %188 = vector.multi_reduction <add>, %187, %cst_55 [1] : vector<4x16xf32> to vector<4xf32>
      %189 = vector.shape_cast %188 : vector<4xf32> to vector<4x1xf32>
      %190 = vector.broadcast %4 : vector<1x1xf32> to vector<4x1xf32>
      %191 = arith.addf %189, %190 : vector<4x1xf32>
      %192 = arith.subf %32, %191 : vector<4x1xf32>
      %193 = tpu.concatenate %180, %180 in 0 : vector<4x17xf32>, vector<4x17xf32> -> vector<8x17xf32>
      %194 = tpu.concatenate %182, %182 in 0 : vector<4x49xf32>, vector<4x49xf32> -> vector<8x49xf32>
      %c0_i32_56 = arith.constant 0 : i32
      %195 = vector.extract_strided_slice %194 {offsets = [0, 17], sizes = [8, 16], strides = [1, 1]} : vector<8x49xf32> to vector<8x16xf32>
      %cst_57 = arith.constant 0.000000e+00 : f32
      %196 = vector.broadcast %cst_57 : f32 to vector<8x16xf32>
      %197 = arith.maximumf %195, %196 : vector<8x16xf32>
      %198 = vector.broadcast %3 : vector<1x16xf32> to vector<8x16xf32>
      %199 = arith.mulf %197, %198 : vector<8x16xf32>
      %cst_58 = arith.constant dense<0.000000e+00> : vector<8xf32>
      %200 = vector.multi_reduction <add>, %199, %cst_58 [1] : vector<8x16xf32> to vector<8xf32>
      %201 = vector.shape_cast %200 : vector<8xf32> to vector<8x1xf32>
      %202 = vector.broadcast %4 : vector<1x1xf32> to vector<8x1xf32>
      %203 = arith.addf %201, %202 : vector<8x1xf32>
      %204 = vector.extract_strided_slice %203 {offsets = [0, 0], sizes = [4, 1], strides = [1, 1]} : vector<8x1xf32> to vector<4x1xf32>
      %205 = arith.sitofp %c0_i32_56 : i32 to f32
      %cst_59 = arith.constant 5.000000e-01 : f32
      %206 = arith.mulf %205, %cst_59 : f32
      %207 = vector.broadcast %206 : f32 to vector<4x1xf32>
      %208 = arith.mulf %207, %192 : vector<4x1xf32>
      %209 = arith.addf %191, %208 : vector<4x1xf32>
      %210 = tpu.concatenate %204, %209 in 0 : vector<4x1xf32>, vector<4x1xf32> -> vector<8x1xf32>
      %211 = vector.extract_strided_slice %194 {offsets = [0, 0], sizes = [8, 17], strides = [1, 1]} : vector<8x49xf32> to vector<8x17xf32>
      %212 = vector.broadcast %210 : vector<8x1xf32> to vector<8x17xf32>
      %213 = arith.mulf %12, %212 : vector<8x17xf32>
      %214 = arith.addf %211, %213 : vector<8x17xf32>
      %cst_60 = arith.constant 5.000000e-02 : f32
      %215 = vector.broadcast %cst_60 : f32 to vector<8x17xf32>
      %216 = arith.mulf %215, %214 : vector<8x17xf32>
      %217 = arith.addf %193, %216 : vector<8x17xf32>
      %218 = arith.truncf %217 : vector<8x17xf32> to vector<8x17xbf16>
      %cst_61 = arith.constant dense<0.000000e+00> : vector<8x49xf32>
      %219 = tpu.matmul %218, %0, %cst_61 {dimension_numbers = #tpu.dot_dimension_numbers<[1], [0], [0], [1], [0, 0, 1, 1], [], []>} : vector<8x17xbf16>, vector<17x49xbf16>, vector<8x49xf32> -> vector<8x49xf32>
      %c1_i32_62 = arith.constant 1 : i32
      %220 = vector.extract_strided_slice %219 {offsets = [0, 17], sizes = [8, 16], strides = [1, 1]} : vector<8x49xf32> to vector<8x16xf32>
      %cst_63 = arith.constant 0.000000e+00 : f32
      %221 = vector.broadcast %cst_63 : f32 to vector<8x16xf32>
      %222 = arith.maximumf %220, %221 : vector<8x16xf32>
      %223 = vector.broadcast %3 : vector<1x16xf32> to vector<8x16xf32>
      %224 = arith.mulf %222, %223 : vector<8x16xf32>
      %cst_64 = arith.constant dense<0.000000e+00> : vector<8xf32>
      %225 = vector.multi_reduction <add>, %224, %cst_64 [1] : vector<8x16xf32> to vector<8xf32>
      %226 = vector.shape_cast %225 : vector<8xf32> to vector<8x1xf32>
      %227 = vector.broadcast %4 : vector<1x1xf32> to vector<8x1xf32>
      %228 = arith.addf %226, %227 : vector<8x1xf32>
      %229 = vector.extract_strided_slice %228 {offsets = [0, 0], sizes = [4, 1], strides = [1, 1]} : vector<8x1xf32> to vector<4x1xf32>
      %230 = arith.sitofp %c1_i32_62 : i32 to f32
      %cst_65 = arith.constant 5.000000e-01 : f32
      %231 = arith.mulf %230, %cst_65 : f32
      %232 = vector.broadcast %231 : f32 to vector<4x1xf32>
      %233 = arith.mulf %232, %192 : vector<4x1xf32>
      %234 = arith.addf %191, %233 : vector<4x1xf32>
      %235 = tpu.concatenate %229, %234 in 0 : vector<4x1xf32>, vector<4x1xf32> -> vector<8x1xf32>
      %236 = vector.extract_strided_slice %219 {offsets = [0, 0], sizes = [8, 17], strides = [1, 1]} : vector<8x49xf32> to vector<8x17xf32>
      %237 = vector.broadcast %235 : vector<8x1xf32> to vector<8x17xf32>
      %238 = arith.mulf %12, %237 : vector<8x17xf32>
      %239 = arith.addf %236, %238 : vector<8x17xf32>
      %cst_66 = arith.constant 5.000000e-02 : f32
      %240 = vector.broadcast %cst_66 : f32 to vector<8x17xf32>
      %241 = arith.mulf %240, %239 : vector<8x17xf32>
      %242 = arith.addf %217, %241 : vector<8x17xf32>
      %243 = arith.truncf %242 : vector<8x17xf32> to vector<8x17xbf16>
      %cst_67 = arith.constant dense<0.000000e+00> : vector<8x49xf32>
      %244 = tpu.matmul %243, %0, %cst_67 {dimension_numbers = #tpu.dot_dimension_numbers<[1], [0], [0], [1], [0, 0, 1, 1], [], []>} : vector<8x17xbf16>, vector<17x49xbf16>, vector<8x49xf32> -> vector<8x49xf32>
      %c2_i32_68 = arith.constant 2 : i32
      %245 = vector.extract_strided_slice %244 {offsets = [0, 0], sizes = [4, 49], strides = [1, 1]} : vector<8x49xf32> to vector<4x49xf32>
      %246 = vector.extract_strided_slice %245 {offsets = [0, 17], sizes = [4, 16], strides = [1, 1]} : vector<4x49xf32> to vector<4x16xf32>
      %cst_69 = arith.constant 0.000000e+00 : f32
      %247 = vector.broadcast %cst_69 : f32 to vector<4x16xf32>
      %248 = arith.maximumf %246, %247 : vector<4x16xf32>
      %249 = vector.broadcast %3 : vector<1x16xf32> to vector<4x16xf32>
      %250 = arith.mulf %248, %249 : vector<4x16xf32>
      %cst_70 = arith.constant dense<0.000000e+00> : vector<4xf32>
      %251 = vector.multi_reduction <add>, %250, %cst_70 [1] : vector<4x16xf32> to vector<4xf32>
      %252 = vector.shape_cast %251 : vector<4xf32> to vector<4x1xf32>
      %253 = vector.broadcast %4 : vector<1x1xf32> to vector<4x1xf32>
      %254 = arith.addf %252, %253 : vector<4x1xf32>
      %255 = vector.extract_strided_slice %245 {offsets = [0, 33], sizes = [4, 16], strides = [1, 1]} : vector<4x49xf32> to vector<4x16xf32>
      %cst_71 = arith.constant 0.000000e+00 : f32
      %256 = vector.broadcast %cst_71 : f32 to vector<4x16xf32>
      %257 = arith.maximumf %255, %256 : vector<4x16xf32>
      %258 = vector.broadcast %6 : vector<1x16xf32> to vector<4x16xf32>
      %259 = arith.mulf %257, %258 : vector<4x16xf32>
      %cst_72 = arith.constant dense<0.000000e+00> : vector<4xf32>
      %260 = vector.multi_reduction <add>, %259, %cst_72 [1] : vector<4x16xf32> to vector<4xf32>
      %261 = vector.shape_cast %260 : vector<4xf32> to vector<4x1xf32>
      %262 = vector.broadcast %5 : vector<1x1xf32> to vector<4x1xf32>
      %263 = arith.addf %261, %262 : vector<4x1xf32>
      %264 = arith.negf %263 : vector<4x1xf32>
      %265 = math.exp %264 : vector<4x1xf32>
      %cst_73 = arith.constant 1.000000e+00 : f32
      %266 = vector.broadcast %cst_73 : f32 to vector<4x1xf32>
      %267 = arith.addf %266, %265 : vector<4x1xf32>
      %268 = arith.divf %266, %267 : vector<4x1xf32>
      %269 = vector.extract_strided_slice %242 {offsets = [0, 0], sizes = [4, 17], strides = [1, 1]} : vector<8x17xf32> to vector<4x17xf32>
      %270 = vector.extract_strided_slice %242 {offsets = [4, 0], sizes = [4, 17], strides = [1, 1]} : vector<8x17xf32> to vector<4x17xf32>
      %271 = vector.broadcast %36 : vector<4x1xf32> to vector<4x17xf32>
      %272 = arith.mulf %270, %271 : vector<4x17xf32>
      %cst_74 = arith.constant 1.000000e+00 : f32
      %273 = vector.broadcast %cst_74 : f32 to vector<4x1xf32>
      %274 = arith.subf %273, %36 : vector<4x1xf32>
      %275 = vector.broadcast %274 : vector<4x1xf32> to vector<4x17xf32>
      %276 = arith.mulf %269, %275 : vector<4x17xf32>
      %277 = arith.addf %272, %276 : vector<4x17xf32>
      %278 = vector.shape_cast %254 : vector<4x1xf32> to vector<4x1xf32>
      %279 = vector.broadcast %278 : vector<4x1xf32> to vector<4x8xf32>
      %280 = arith.select %28, %279, %arg9 : vector<4x8xi1>, vector<4x8xf32>
      %281 = vector.shape_cast %268 : vector<4x1xf32> to vector<4x1xf32>
      %282 = vector.broadcast %281 : vector<4x1xf32> to vector<4x8xf32>
      %283 = arith.select %28, %282, %arg10 : vector<4x8xi1>, vector<4x8xf32>
      scf.yield %277, %280, %283 : vector<4x17xf32>, vector<4x8xf32>, vector<4x8xf32>
    }
    %c8_i32_8 = arith.constant 8 : i32
    %23 = vector.extract_strided_slice %22#0 {offsets = [0, 0], sizes = [4, 16], strides = [1, 1]} : vector<4x17xf32> to vector<4x16xf32>
    %c0_9 = arith.constant 0 : index
    %c0_10 = arith.constant 0 : index
    %24 = vector.load %arg4[%c0_9, %c0_10] : memref<4x16xf32, #tpu.memory_space<vmem>>, vector<4x16xf32>
    tpu.vector_store %arg4[%c0_9, %c0_10], %23 {strides = array<i32>} : memref<4x16xf32, #tpu.memory_space<vmem>>, vector<4x16xf32>,
    %c0_11 = arith.constant 0 : index
    %c0_12 = arith.constant 0 : index
    %25 = vector.load %arg5[%c0_11, %c0_12] : memref<4x8xf32, #tpu.memory_space<vmem>>, vector<4x8xf32>
    tpu.vector_store %arg5[%c0_11, %c0_12], %22#1 {strides = array<i32>} : memref<4x8xf32, #tpu.memory_space<vmem>>, vector<4x8xf32>,
    %c0_13 = arith.constant 0 : index
    %c0_14 = arith.constant 0 : index
    %26 = vector.load %arg6[%c0_13, %c0_14] : memref<4x8xf32, #tpu.memory_space<vmem>>, vector<4x8xf32>
    tpu.vector_store %arg6[%c0_13, %c0_14], %22#2 {strides = array<i32>} : memref<4x8xf32, #tpu.memory_space<vmem>>, vector<4x8xf32>,
    return
  }
}

</mosaic_0001>

<bundles_post_ra>
// kernel: fwd.1
= control target key start
LH: loop header
LB: loop body
LE: loop exit
PB: predicated region body
PF: predicated region fallthrough
CT: control target
= control target key end

     0   :  { %12 = vsyncpa [#allocation3], 0  ;;  %s1255_s0 = inlined_call_operand.hbm [shape: bf16[17,49], index: 0, kind: input, shape index: {}]   ;;  %s1256_s1 = inlined_call_operand.hbm [shape: f32[8,17], index: 1, kind: input, shape index: {}]   ;;  %s1257_s2 = inlined_call_operand.hbm [shape: f32[4,8], index: 2, kind: input, shape index: {}]   ;;  %s1258_s3 = inlined_call_operand.hbm [shape: f32[4,8], index: 3, kind: input, shape index: {}]   ;;  %s1259_s4 = inlined_call_operand.hbm [shape: f32[4,16], index: 4, kind: output, shape index: {0}]   ;;  %s1260_s5 = inlined_call_operand.hbm [shape: f32[4,8], index: 5, kind: output, shape index: {1}]   ;;  %s1261_s6 = inlined_call_operand.hbm [shape: f32[4,8], index: 6, kind: output, shape index: {2}]  }
   0x1   :  { %13 = vsyncpa [#allocation6], 0 }
   0x2   :  { %14 = vsyncpa [#allocation9], 0 }
   0x3   :  { %15 = vsyncpa [#allocation4], 0  ;;  %s35_s23 = sshll.u32 %s1256_s1, 4  ;;  %s36_s23 = int_to_ptr.hbm [resolvable:$true] %s35_s23 }
   0x4   :  { %16 = vsyncpa [#allocation12], 0  ;;  %s1005_s24 = smov [#allocation5]   ;;  %s21_s28 = sshll.u32 %s1255_s0, 4  ;;  %s22_s28 = int_to_ptr.hbm [resolvable:$true] %s21_s28 }
   0x5   :  { %s37_s25 = sshll.u32 %s1005_s24, 4  ;;  %s1006_s29 = smov [#allocation2]   ;;  %s38_s25 = int_to_ptr.vmem [resolvable:$true] %s37_s25 }
   0x6   :  { %40 = dma.hbm_to_vmem [thread:$0]  %s36_s23, 128, %s38_s25, [#allocation6]  }
   0x7   :  { %s23_s30 = sshll.u32 %s1006_s29, 4  ;;  %s1007_s7 = smov 64   ;;  %s24_s30 = int_to_ptr.vmem [resolvable:$true] %s23_s30 }
   0x8   :  { %s1008_s8 = smov 4   ;;  %s46_s1 = sshll.u32 %s1257_s2, 4  ;;  %s47_s1 = int_to_ptr.hbm [resolvable:$true] %s46_s1 }
   0x9   :  { %29 = dma.hbm_to_vmem [thread:$0]  %s22_s28, 192, %s24_s30, [#allocation3], %s1007_s7, %s1007_s7, %s1008_s8  }
   0xa   :  { %s1009_s11 = smov [#allocation7]   ;;  %s57_s0 = sshll.u32 %s1258_s3, 4  ;;  %s58_s0 = int_to_ptr.hbm [resolvable:$true] %s57_s0 }
   0xb   :  { %s48_s12 = sshll.u32 %s1009_s11, 4  ;;  %s1010_s15 = smov [#allocation8]   ;;  %s49_s12 = int_to_ptr.vmem [resolvable:$true] %s48_s12 }
   0xc   :  { %51 = dma.hbm_to_vmem [thread:$0]  %s47_s1, 64, %s49_s12, [#allocation6]  }
   0xd   :  { %s59_s16 = sshll.u32 %s1010_s15, 4  ;;  %s60_s16 = int_to_ptr.vmem [resolvable:$true] %s59_s16 }
   0xe   :  { %62 = dma.hbm_to_vmem [thread:$0]  %s58_s0, 64, %s60_s16, [#allocation9]  }
   0xf   :  { %979 = dma.done.wait [#allocation3], 192  }
  0x10   :  { %980 = vsyncadd [#allocation3], 4294967104 }
  0x11   :  { %981 = dma.done.wait [#allocation6], 192  }
  0x12   :  { %982 = vsyncadd [#allocation6], 4294967104 }
  0x13   :  { %983 = dma.done.wait [#allocation9], 64  }
  0x14   :  { %984 = vsyncadd [#allocation9], 4294967232  ;;  %v87_v0 = vlaneseq  ;;  %v1011_v2 = vmov 0.0   ;;  %v1071_v4 = vld [vmem:[#allocation2] sm:$0xf]  ;;  %v1077_v7 = vld [vmem:[#allocation5] sm:$0xff] }
  0x15   :  { %v1073_v5 = vld [vmem:[#allocation2] sm:$0xf0]  ;;  %v1075_v6 = vld [vmem:[#allocation2 + $0x8] sm:$0x1]  ;;  %v1079_v8 = vld [vmem:[#allocation7] sm:$0xf] }
  0x16   :  { %v1068_v1 = vand.u32 127, %v87_v0  ;;  %v1081_v9 = vld [vmem:[#allocation8] sm:$0xf]  ;;  %v1084_v10 = vperm.slane %v1077_v7, 0  ;;  %v1086_v11 = vmov 0.0   ;;  %v1088_v12 = vmov 0.0  }
  0x17   :  { %s1092_s2 = smov 0  }
  0x18   :  { %vm89_vm0 = vcmp.eq.s32.totalorder %v1068_v1, 16 }
  0x19   :  { %v721_v3 = vsel %vm89_vm0, 1.0, %v1011_v2  }
  0x1a LB: > { %v120_v13 = vunpack.c.l.b16 %v1075_v6  ;;  %vm128_vm1 = vcmask 1040384   ;;  %v1012_v14 = vmov 0   ;;  %v148_v16 = vperm.slane %v1077_v7, 1  ;;  %s1013_s3 = smov 17   ;;  %s1014_s17 = smov 111   ;;  %s1003_s2 = sphi %s1092_s2, %s97_s2   ;;  %v999_v3 = vphi %v721_v3, %v1266_v3   ;;  %v995_v12 = vphi %v1088_v12, %v1265_v12   ;;  %v991_v11 = vphi %v1086_v11, %v1264_v11  }
  0x1b   : > { %v130_v15 = vsel %vm128_vm1, 65535, %v1012_v14  ;;  %787 = vset.pattern.permute.xlu1 %v1012_v14  ;;  %788 = vset.pattern.permute.xlu0 %v1012_v14  ;;  %v112_v19 = vpack.c.bf16 %v999_v3, %v999_v3  ;;  %v1111_v20 = vor.u32 %v1073_v5, %v1071_v4  ;;  %vm124_vm2 = vcmask 138240   ;;  %s1015_s18 = smov 33   ;;  %s1016_s19 = smov 95  }
  0x1c   : > { %v122_v17 = vpack.c.b16 %v120_v13, %v120_v13  ;;  %150 = vrot.lane.b32.xlu0 %v148_v16, %s1013_s3  ;;  %vm158_vm3 = vcmask 125952   ;;  %v1137_v29 = vperm.slane %v1077_v7, 2  ;;  %vm496_vm4 = vcmask 1043456  }
  0x1d   : > { %v114_v21 = vrot.slane %v112_v19, 2  ;;  %vm104_vm6 = vcmask 60416   ;;  %vm508_vm7 = vcmask 130048  }
  0x1e   : > { %v1106_v18 = vand.u32 %v130_v15, %v122_v17 }
  0x20   : > { %140 = vmatpush.bf16.msra.mxu0 %v1106_v18  ;;  %188 = vmatpush.bf16.msra.mxu1 %v1106_v18 }
  0x21   : > { %229 = vmatpush.bf16.msra.mxu2 %v1106_v18  ;;  %270 = vmatpush.bf16.msra.mxu3 %v1106_v18 }
  0x24   : > { %141 = vmatpush.bf16.msra.mxu0 %v1111_v20  ;;  %189 = vmatpush.bf16.msra.mxu1 %v1111_v20 }
  0x25   : > { %230 = vmatpush.bf16.msra.mxu2 %v1111_v20  ;;  %271 = vmatpush.bf16.msra.mxu3 %v1111_v20 }
  0x27   : > { %726 = vmatmul.msk.bf16.vlgmr.msra.gmra.mxu0 %vm124_vm2, %v114_v21 }
  0x28   : > { %311 = vmatpush.bf16.msrb.mxu0 %v1106_v18  ;;  %352 = vmatpush.bf16.msrb.mxu1 %v1106_v18 }
  0x29   : > { %393 = vmatpush.bf16.msrb.mxu2 %v1106_v18  ;;  %434 = vmatpush.bf16.msrb.mxu3 %v1106_v18 }
  0x2c   : > { %312 = vmatpush.bf16.msrb.mxu0 %v1111_v20  ;;  %353 = vmatpush.bf16.msrb.mxu1 %v1111_v20 }
  0x2d   : > { %394 = vmatpush.bf16.msrb.mxu2 %v1111_v20  ;;  %435 = vmatpush.bf16.msrb.mxu3 %v1111_v20 }
  0x30   : > { %475 = vmatpush.bf16.msra.mxu0 %v1106_v18 }
  0x34   : > { %476 = vmatpush.bf16.msra.mxu0 %v1111_v20 }
  0x8e   : > { %v1131_v23 = vpop.permute.xlu0 %150 }
  0xa4   : > { %v143_v22 = vpop.f32.mrf.mxu0 }
  0xa5   : > { %v147_v24 = vmax.f32 %v143_v22, 0.0 }
  0xa7   : > { %v153_v25 = vmul.f32 %v1131_v23, %v147_v24 }
  0xa9   : > { %155 = vrot.lane.b32.xlu0 %v153_v25, %s1014_s17 }
  0xac   : > { %v145_v26 = vpop.f32.mrf.mxu0 }
 0x11b   : > { %v156_v27 = vpop.permute.xlu0 %155 }
 0x11c   : > { %v159_v28 = vsel %vm158_vm3, %v156_v27, 0.0 }
 0x11d   : > { %160 = vadd.xlane.f32.xlu1 %v159_v28 }
 0x190   : > { %v161_v30 = vpop.xlane.xlu1 %160 }
 0x191   : > { %v163_v31 = vadd.f32 %v1137_v29, %v161_v30 }
 0x193   : > { %166 = vperm.xlu1 %787, %v163_v31  }
 0x205   : > { %v167_v32 = vpop.permute.xlu1 %166 }
 0x206   : > { %v169_v33 = vmul.f32 %v167_v32, %v1084_v10 }
 0x208   : > { %v170_v34 = vadd.f32 %v169_v33, %v143_v22 }
 0x20a   : > { %v171_v35 = vmul.f32 0.05, %v170_v34 }
 0x20c   : > { %v173_v36 = vrot.slane %v171_v35, 4 }
 0x20e   : > { %v175_v37 = vadd.f32 %v999_v3, %v173_v36 }
 0x210   : > { %v176_v38 = vpack.c.bf16 %v175_v37, %v175_v37 }
 0x212   : > { %v178_v39 = vrot.slane %v176_v38, 2 }
 0x214   : > { %727 = vmatmul.msk.bf16.vlgmr.msra.gmra.mxu1 %vm124_vm2, %v178_v39 }
 0x215   : > { %538 = vmatpush.bf16.msra.mxu1 %v1106_v18 }
 0x219   : > { %539 = vmatpush.bf16.msra.mxu1 %v1111_v20 }
 0x291   : > { %v191_v40 = vpop.f32.mrf.mxu1 }
 0x292   : > { %v195_v41 = vmax.f32 %v191_v40, 0.0 }
 0x294   : > { %v196_v42 = vmul.f32 %v195_v41, %v1131_v23 }
 0x296   : > { %198 = vrot.lane.b32.xlu2 %v196_v42, %s1014_s17 }
 0x299   : > { %v193_v43 = vpop.f32.mrf.mxu1 }
 0x2f0   : > { %v199_v44 = vpop.permute.xlu2 %198 }
 0x2f1   : > { %v201_v45 = vsel %vm158_vm3, %v199_v44, 0.0 }
 0x2f2   : > { %202 = vadd.xlane.f32.xlu2 %v201_v45 }
 0x365   : > { %v203_v46 = vpop.xlane.xlu2 %202 }
 0x366   : > { %v204_v47 = vadd.f32 %v203_v46, %v1137_v29 }
 0x368   : > { %207 = vperm.xlu0 %788, %v204_v47  }
 0x3da   : > { %v208_v48 = vpop.permute.xlu0 %207 }
 0x3db   : > { %v210_v49 = vmul.f32 %v208_v48, %v1084_v10 }
 0x3dd   : > { %v211_v50 = vadd.f32 %v210_v49, %v191_v40 }
 0x3df   : > { %v212_v51 = vmul.f32 0.05, %v211_v50 }
 0x3e1   : > { %v214_v52 = vrot.slane %v212_v51, 4 }
 0x3e3   : > { %v216_v53 = vadd.f32 %v214_v52, %v175_v37 }
 0x3e5   : > { %v217_v54 = vpack.c.bf16 %v216_v53, %v216_v53 }
 0x3e7   : > { %v219_v55 = vrot.slane %v217_v54, 2 }
 0x3e9   : > { %728 = vmatmul.msk.bf16.vlgmr.msra.gmra.mxu2 %vm124_vm2, %v219_v55 }
 0x3ea   : > { %580 = vmatpush.bf16.msra.mxu2 %v1106_v18 }
 0x3ee   : > { %581 = vmatpush.bf16.msra.mxu2 %v1111_v20 }
 0x46c   : > { %v232_v56 = vpop.f32.mrf.mxu2 }
 0x46d   : > { %v236_v57 = vmax.f32 %v232_v56, 0.0 }
 0x46f   : > { %v237_v58 = vmul.f32 %v236_v57, %v1131_v23 }
 0x471   : > { %239 = vrot.lane.b32.xlu0 %v237_v58, %s1014_s17 }
 0x474   : > { %v234_v59 = vpop.f32.mrf.mxu2 }
 0x4e3   : > { %v240_v60 = vpop.permute.xlu0 %239 }
 0x4e4   : > { %v242_v61 = vsel %vm158_vm3, %v240_v60, 0.0 }
 0x4e5   : > { %243 = vadd.xlane.f32.xlu1 %v242_v61 }
 0x558   : > { %v244_v62 = vpop.xlane.xlu1 %243 }
 0x559   : > { %v245_v63 = vadd.f32 %v244_v62, %v1137_v29 }
 0x55b   : > { %248 = vperm.xlu0 %788, %v245_v63  }
 0x5cd   : > { %v249_v0 = vpop.permute.xlu0 %248 }
 0x5ce   : > { %v251_v2 = vmul.f32 %v249_v0, %v1084_v10 }
 0x5d0   : > { %v252_v3 = vadd.f32 %v251_v2, %v232_v56 }
 0x5d2   : > { %v253_v13 = vmul.f32 0.05, %v252_v3 }
 0x5d4   : > { %v255_v14 = vrot.slane %v253_v13, 4 }
 0x5d6   : > { %v257_v15 = vadd.f32 %v255_v14, %v216_v53 }
 0x5d8   : > { %v258_v16 = vpack.c.bf16 %v257_v15, %v257_v15 }
 0x5da   : > { %v260_v17 = vrot.slane %v258_v16, 2 }
 0x5dc   : > { %729 = vmatmul.msk.bf16.vlgmr.msra.gmra.mxu3 %vm124_vm2, %v260_v17 }
 0x65f   : > { %v273_v18 = vpop.f32.mrf.mxu3 }
 0x660   : > { %v277_v19 = vmax.f32 %v273_v18, 0.0 }
 0x662   : > { %v278_v20 = vmul.f32 %v277_v19, %v1131_v23 }
 0x664   : > { %280 = vrot.lane.b32.xlu0 %v278_v20, %s1014_s17 }
 0x667   : > { %v275_v21 = vpop.f32.mrf.mxu3 }
 0x6d6   : > { %v281_v22 = vpop.permute.xlu0 %280 }
 0x6d7   : > { %v283_v24 = vsel %vm158_vm3, %v281_v22, 0.0 }
 0x6d8   : > { %284 = vadd.xlane.f32.xlu2 %v283_v24 }
 0x74b   : > { %v285_v25 = vpop.xlane.xlu2 %284 }
 0x74c   : > { %v286_v26 = vadd.f32 %v285_v25, %v1137_v29 }
 0x74e   : > { %289 = vperm.xlu0 %788, %v286_v26  }
 0x7c0   : > { %v290_v27 = vpop.permute.xlu0 %289 }
 0x7c1   : > { %v292_v28 = vmul.f32 %v290_v27, %v1084_v10 }
 0x7c3   : > { %v293_v30 = vadd.f32 %v292_v28, %v273_v18 }
 0x7c5   : > { %v294_v31 = vmul.f32 0.05, %v293_v30 }
 0x7c7   : > { %v296_v32 = vrot.slane %v294_v31, 4 }
 0x7c9   : > { %v298_v33 = vadd.f32 %v296_v32, %v257_v15 }
 0x7cb   : > { %v299_v34 = vpack.c.bf16 %v298_v33, %v298_v33 }
 0x7cd   : > { %v301_v35 = vrot.slane %v299_v34, 2 }
 0x7cf   : > { %730 = vmatmul.msk.bf16.vlgmr.msrb.gmra.mxu0 %vm124_vm2, %v301_v35 }
 0x84c   : > { %v314_v36 = vpop.f32.mrf.mxu0 }
 0x84d   : > { %v318_v37 = vmax.f32 %v314_v36, 0.0 }
 0x84f   : > { %v319_v38 = vmul.f32 %v318_v37, %v1131_v23 }
 0x851   : > { %321 = vrot.lane.b32.xlu2 %v319_v38, %s1014_s17 }
 0x854   : > { %v316_v39 = vpop.f32.mrf.mxu0 }
 0x8ab   : > { %v322_v40 = vpop.permute.xlu2 %321 }
 0x8ac   : > { %v324_v41 = vsel %vm158_vm3, %v322_v40, 0.0 }
 0x8ad   : > { %325 = vadd.xlane.f32.xlu0 %v324_v41 }
 0x920   : > { %v326_v42 = vpop.xlane.xlu0 %325 }
 0x921   : > { %v327_v43 = vadd.f32 %v326_v42, %v1137_v29 }
 0x923   : > { %330 = vperm.xlu1 %787, %v327_v43  }
 0x995   : > { %v331_v44 = vpop.permute.xlu1 %330 }
 0x996   : > { %v333_v45 = vmul.f32 %v331_v44, %v1084_v10 }
 0x998   : > { %v334_v46 = vadd.f32 %v333_v45, %v314_v36 }
 0x99a   : > { %v335_v47 = vmul.f32 0.05, %v334_v46 }
 0x99c   : > { %v337_v48 = vrot.slane %v335_v47, 4 }
 0x99e   : > { %v339_v49 = vadd.f32 %v337_v48, %v298_v33 }
 0x9a0   : > { %v340_v50 = vpack.c.bf16 %v339_v49, %v339_v49 }
 0x9a2   : > { %v342_v51 = vrot.slane %v340_v50, 2 }
 0x9a4   : > { %731 = vmatmul.msk.bf16.vlgmr.msrb.gmra.mxu1 %vm124_vm2, %v342_v51 }
 0xa21   : > { %v355_v52 = vpop.f32.mrf.mxu1 }
 0xa22   : > { %v359_v53 = vmax.f32 %v355_v52, 0.0 }
 0xa24   : > { %v360_v54 = vmul.f32 %v359_v53, %v1131_v23 }
 0xa26   : > { %362 = vrot.lane.b32.xlu2 %v360_v54, %s1014_s17 }
 0xa29   : > { %v357_v55 = vpop.f32.mrf.mxu1 }
 0xa80   : > { %v363_v56 = vpop.permute.xlu2 %362 }
 0xa81   : > { %v365_v57 = vsel %vm158_vm3, %v363_v56, 0.0  ;;  %v101_v56 = vstv %s1003_s2  ;;  %s97_s2 = sadd.s32 1, %s1003_s2  }
 0xa82   : > { %366 = vadd.xlane.f32.xlu2 %v365_v57  ;;  %vm1195_vm5 = vcmp.eq.s32.totalorder %v1068_v1, %v101_v56  ;;  %p94_p0 = scmp.ge.s32.totalorder %s97_s2, 8  }
 0xa83   :  { %vm652_vm12 = vcmask (%p94_p0), 130052   ;;  %s675_s22 = sshll.u32 (%p94_p0), %s1260_s5, 4  ;;  %s1018_s23 = smov (%p94_p0), [#allocation11]   ;;  %s676_s22 = int_to_ptr.hbm [resolvable:$true] %s675_s22 }
 0xa84   :  { %s673_s24 = sshll.u32 (%p94_p0), %s1018_s23, 4  ;;  %s1019_s25 = smov (%p94_p0), [#allocation10]   ;;  %s674_s24 = int_to_ptr.vmem [resolvable:$true] %s673_s24 }
 0xa85   :  { %s662_s26 = sshll.u32 (%p94_p0), %s1019_s25, 4  ;;  %s664_s29 = sshll.u32 (%p94_p0), %s1259_s4, 4  ;;  %s663_s26 = int_to_ptr.vmem [resolvable:$true] %s662_s26  ;;  %s665_s29 = int_to_ptr.hbm [resolvable:$true] %s664_s29 }
 0xa86   :  { %s686_s5 = sshll.u32 (%p94_p0), %s1261_s6, 4  ;;  %s1020_s8 = smov (%p94_p0), [#allocation13]   ;;  %s687_s5 = int_to_ptr.hbm [resolvable:$true] %s686_s5 }
 0xa87   :  { %s684_s9 = sshll.u32 (%p94_p0), %s1020_s8, 4  ;;  %s685_s9 = int_to_ptr.vmem [resolvable:$true] %s684_s9 }
 0xaf5   : > { %v367_v58 = vpop.xlane.xlu2 %366 }
 0xaf6   : > { %v368_v59 = vadd.f32 %v367_v58, %v1137_v29  ;;  %v103_v58 = vsel %vm1195_vm5, %v1079_v8, 0.0 }
 0xaf8   : > { %371 = vperm.xlu1 %787, %v368_v59   ;;  %v105_v59 = vsel %vm104_vm6, %v103_v58, 0.0 }
 0xb6a   : > { %v372_v60 = vpop.permute.xlu1 %371 }
 0xb6b   : > { %v374_v61 = vmul.f32 %v372_v60, %v1084_v10 }
 0xb6d   : > { %v375_v62 = vadd.f32 %v374_v61, %v355_v52 }
 0xb6f   : > { %v376_v63 = vmul.f32 0.05, %v375_v62 }
 0xb71   : > { %v378_v0 = vrot.slane %v376_v63, 4 }
 0xb73   : > { %v380_v2 = vadd.f32 %v378_v0, %v339_v49 }
 0xb75   : > { %v381_v3 = vpack.c.bf16 %v380_v2, %v380_v2 }
 0xb77   : > { %v383_v13 = vrot.slane %v381_v3, 2 }
 0xb79   : > { %732 = vmatmul.msk.bf16.vlgmr.msrb.gmra.mxu2 %vm124_vm2, %v383_v13 }
 0xbfc   : > { %v396_v14 = vpop.f32.mrf.mxu2 }
 0xbfd   : > { %v400_v15 = vmax.f32 %v396_v14, 0.0 }
 0xbff   : > { %v401_v16 = vmul.f32 %v400_v15, %v1131_v23 }
 0xc01   : > { %403 = vrot.lane.b32.xlu0 %v401_v16, %s1014_s17 }
 0xc04   : > { %v398_v17 = vpop.f32.mrf.mxu2 }
 0xc73   : > { %v404_v18 = vpop.permute.xlu0 %403 }
 0xc74   : > { %v406_v19 = vsel %vm158_vm3, %v404_v18, 0.0 }
 0xc75   : > { %407 = vadd.xlane.f32.xlu1 %v406_v19 }
 0xce8   : > { %v408_v20 = vpop.xlane.xlu1 %407 }
 0xce9   : > { %v409_v21 = vadd.f32 %v408_v20, %v1137_v29 }
 0xceb   : > { %412 = vperm.xlu0 %788, %v409_v21  }
 0xd5d   : > { %v413_v22 = vpop.permute.xlu0 %412 }
 0xd5e   : > { %v415_v24 = vmul.f32 %v413_v22, %v1084_v10 }
 0xd60   : > { %v416_v25 = vadd.f32 %v415_v24, %v396_v14 }
 0xd62   : > { %v417_v26 = vmul.f32 0.05, %v416_v25 }
 0xd64   : > { %v419_v27 = vrot.slane %v417_v26, 4 }
 0xd66   : > { %v421_v28 = vadd.f32 %v419_v27, %v380_v2 }
 0xd68   : > { %v422_v30 = vpack.c.bf16 %v421_v28, %v421_v28 }
 0xd6a   : > { %v424_v31 = vrot.slane %v422_v30, 2 }
 0xd6c   : > { %733 = vmatmul.msk.bf16.vlgmr.msrb.gmra.mxu3 %vm124_vm2, %v424_v31 }
 0xdef   : > { %v437_v32 = vpop.f32.mrf.mxu3 }
 0xdf0   : > { %v441_v33 = vmax.f32 %v437_v32, 0.0 }
 0xdf2   : > { %v442_v34 = vmul.f32 %v441_v33, %v1131_v23 }
 0xdf4   : > { %444 = vrot.lane.b32.xlu2 %v442_v34, %s1014_s17 }
 0xdf7   : > { %v439_v35 = vpop.f32.mrf.mxu3 }
 0xe4e   : > { %v445_v36 = vpop.permute.xlu2 %444 }
 0xe4f   : > { %v447_v37 = vsel %vm158_vm3, %v445_v36, 0.0 }
 0xe50   : > { %448 = vadd.xlane.f32.xlu0 %v447_v37 }
 0xec3   : > { %v449_v38 = vpop.xlane.xlu0 %448 }
 0xec4   : > { %v450_v39 = vadd.f32 %v449_v38, %v1137_v29 }
 0xec6   : > { %453 = vperm.xlu1 %787, %v450_v39  }
 0xef0   : > { %106 = vadd.xlane.f32.xlu1 %v105_v59 }
 0xf38   : > { %v454_v40 = vpop.permute.xlu1 %453 }
 0xf39   : > { %v456_v41 = vmul.f32 %v454_v40, %v1084_v10 }
 0xf3b   : > { %v457_v42 = vadd.f32 %v456_v41, %v437_v32 }
 0xf3d   : > { %v458_v43 = vmul.f32 0.05, %v457_v42  ;;  %v597_v42 = vperm.slane %v1077_v7, 3 }
 0xf3f   : > { %v460_v44 = vrot.slane %v458_v43, 4  ;;  %599 = vrot.lane.b32.xlu1 %v597_v42, %s1015_s18 }
 0xf41   : > { %v462_v45 = vadd.f32 %v460_v44, %v421_v28 }
 0xf43   : > { %v463_v46 = vpack.c.bf16 %v462_v45, %v462_v45  ;;  %v494_v25 = vrot.slane %v462_v45, 4 }
 0xf45   : > { %v465_v47 = vrot.slane %v463_v46, 2  ;;  %v497_v28 = vsel %vm496_vm4, %v494_v25, %v462_v45 }
 0xf47   : > { %734 = vmatmul.msk.bf16.vlgmr.msra.gmra.mxu0 %vm124_vm2, %v465_v47 }
 0xf63   : > { %v107_v2 = vpop.xlane.xlu1 %106 }
 0xfc4   : > { %v478_v48 = vpop.f32.mrf.mxu0 }
 0xfc5   : > { %v482_v49 = vmax.f32 %v478_v48, 0.0  ;;  %v499_v50 = vrot.slane %v478_v48, 4 }
 0xfc7   : > { %v483_v51 = vmul.f32 %v482_v49, %v1131_v23  ;;  %v501_v52 = vsel %vm496_vm4, %v478_v48, %v499_v50  ;;  %v600_v50 = vpop.permute.xlu1 %599 }
 0xfc8   : > { %v502_v53 = vmax.f32 %v501_v52, 0.0 }
 0xfc9   : > { %485 = vrot.lane.b32.xlu2 %v483_v51, %s1014_s17 }
 0xfca   : > { %v503_v55 = vmul.f32 %v502_v53, %v1131_v23 }
 0xfcc   : > { %v480_v54 = vpop.f32.mrf.mxu0 }
 0xfd1   : > { %505 = vrot.lane.b32.xlu2 %v503_v55, %s1014_s17  ;;  %v108_v55 = vsel %vm1195_vm5, %v1081_v9, 0.0 }
 0xfd2   : > { %v109_v56 = vsel %vm104_vm6, %v108_v55, 0.0 }
0x1023   : > { %v486_v60 = vpop.permute.xlu2 %485 }
0x1024   : > { %v488_v61 = vsel %vm158_vm3, %v486_v60, 0.0 }
0x1025   : > { %489 = vadd.xlane.f32.xlu2 %v488_v61 }
0x102b   : > { %v506_v62 = vpop.permute.xlu2 %505 }
0x102c   : > { %v509_v63 = vsel %vm508_vm7, %v506_v62, 0.0 }
0x102d   : > { %510 = vadd.xlane.f32.xlu0 %v509_v63 }
0x1098   : > { %v490_v0 = vpop.xlane.xlu2 %489 }
0x1099   : > { %v491_v3 = vadd.f32 %v490_v0, %v1137_v29 }
0x109b   : > { %v492_v13 = vsub.f32 %v107_v2, %v491_v3 }
0x109d   : > { %v513_v14 = vmul.f32 0.0, %v492_v13  ;;  %v555_v15 = vmul.f32 0.5, %v492_v13 }
0x109f   : > { %v514_v16 = vadd.f32 %v513_v14, %v491_v3  ;;  %v556_v17 = vadd.f32 %v555_v15, %v491_v3  ;;  %v1017_v14 = vmov 1  }
0x10a0   : > { %v511_v18 = vpop.xlane.xlu0 %510  ;;  %789 = vset.pattern.permute.xlu1 %v1017_v14 }
0x10a1   : > { %v516_v19 = vrot.slane %v514_v16, 4  ;;  %v512_v20 = vadd.f32 %v511_v18, %v1137_v29  ;;  %v558_v39 = vrot.slane %v556_v17, 4 }
0x10a3   : > { %v518_v21 = vsel %vm496_vm4, %v512_v20, %v516_v19 }
0x10a4   : > { %521 = vperm.xlu0 %788, %v518_v21  }
0x1116   : > { %v522_v22 = vpop.permute.xlu0 %521 }
0x1117   : > { %v524_v24 = vmul.f32 %v522_v22, %v1084_v10 }
0x1119   : > { %v525_v26 = vadd.f32 %v524_v24, %v501_v52 }
0x111b   : > { %v526_v27 = vmul.f32 0.05, %v525_v26 }
0x111d   : > { %v527_v30 = vadd.f32 %v526_v27, %v497_v28 }
0x111f   : > { %v528_v31 = vpack.c.bf16 %v527_v30, %v527_v30 }
0x1121   : > { %735 = vmatmul.msk.bf16.vlgmr.msra.gmra.mxu1 %vm124_vm2, %v528_v31 }
0x119e   : > { %v541_v32 = vpop.f32.mrf.mxu1 }
0x119f   : > { %v545_v33 = vmax.f32 %v541_v32, 0.0 }
0x11a1   : > { %v546_v34 = vmul.f32 %v545_v33, %v1131_v23 }
0x11a3   : > { %548 = vrot.lane.b32.xlu0 %v546_v34, %s1014_s17 }
0x11a6   : > { %v543_v35 = vpop.f32.mrf.mxu1 }
0x1215   : > { %v549_v36 = vpop.permute.xlu0 %548 }
0x1216   : > { %v551_v37 = vsel %vm508_vm7, %v549_v36, 0.0 }
0x1217   : > { %552 = vadd.xlane.f32.xlu2 %v551_v37 }
0x128a   : > { %v553_v38 = vpop.xlane.xlu2 %552 }
0x128b   : > { %v554_v40 = vadd.f32 %v553_v38, %v1137_v29 }
0x128d   : > { %v560_v41 = vsel %vm496_vm4, %v554_v40, %v558_v39 }
0x128e   : > { %563 = vperm.xlu0 %788, %v560_v41  }
0x1300   : > { %v564_v43 = vpop.permute.xlu0 %563 }
0x1301   : > { %v566_v44 = vmul.f32 %v564_v43, %v1084_v10 }
0x1303   : > { %v567_v45 = vadd.f32 %v566_v44, %v541_v32 }
0x1305   : > { %v568_v46 = vmul.f32 0.05, %v567_v45 }
0x1307   : > { %v569_v47 = vadd.f32 %v568_v46, %v527_v30 }
0x1309   : > { %v570_v48 = vpack.c.bf16 %v569_v47, %v569_v47 }
0x130b   : > { %736 = vmatmul.msk.bf16.vlgmr.msra.gmra.mxu2 %vm124_vm2, %v570_v48 }
0x138e   : > { %v583_v49 = vpop.f32.mrf.mxu2 }
0x138f   : > { %v587_v51 = vmax.f32 %v583_v49, 0.0 }
0x1391   : > { %v588_v52 = vmul.f32 %v587_v51, %v1131_v23  ;;  %v602_v53 = vmul.f32 %v600_v50, %v587_v51 }
0x1393   : > { %604 = vrot.lane.b32.xlu2 %v602_v53, %s1016_s19  ;;  %590 = vrot.lane.b32.xlu0 %v588_v52, %s1014_s17 }
0x1396   : > { %v585_v54 = vpop.f32.mrf.mxu2 }
0x13bc   : > { %110 = vadd.xlane.f32.xlu2 %v109_v56 }
0x13ed   : > { %v605_v58 = vpop.permute.xlu2 %604 }
0x13ee   : > { %v607_v59 = vsel %vm158_vm3, %v605_v58, 0.0 }
0x13ef   : > { %608 = vadd.xlane.f32.xlu0 %v607_v59 }
0x1405   : > { %v591_v60 = vpop.permute.xlu0 %590 }
0x1406   : > { %v593_v23 = vsel %vm158_vm3, %v591_v60, 0.0 }
0x1407   : > { %594 = vadd.xlane.f32.xlu1 %v593_v23 }
0x142f   : > { %v111_v61 = vpop.xlane.xlu2 %110 }
0x1430   : > { %v631_v62 = vrot.slane %v111_v61, 4  ;;  %v634_v63 = vsub.f32 1.0, %v111_v61 }
0x1432   : > { %v635_v0 = vmul.f32 %v634_v63, %v569_v47  ;;  %v633_v2 = vmul.f32 %v631_v62, %v569_v47 }
0x1434   : > { %v637_v3 = vrot.slane %v635_v0, 4 }
0x1436   : > { %v639_v13 = vadd.f32 %v637_v3, %v633_v2  }
0x1438   : > { %v1266_v3 = vmov %v639_v13  ;;  %653 = vst.msk [vmem:[#allocation10 - $0x4] sm:$0xf0] (%p94_p0), %vm652_vm12, %v639_v13 }
0x1439   :  { %667 = dma.vmem_to_hbm [thread:$0]  (%p94_p0), %s663_s26, 64, %s665_s29, [#allocation4]  }
0x1462   : > { %v609_v15 = vpop.xlane.xlu0 %608 }
0x1463   : > { %v610_v16 = vadd.f32 %v609_v15, %v1137_v29 }
0x1465   : > { %v737_v17 = vmul.f32 -1.442695, %v610_v16 }
0x1467   : > { %791 = vpow2.f32 %v737_v17 }
0x146d   : > { %v792_v18 = vpop.eup %791 }
0x146e   : > { %v614_v19 = vadd.f32 1.0, %v792_v18 }
0x1470   : > { %793 = vrcp.f32 %v614_v19  ;;  %v626_v25 = vand.u32 2147483648, %v614_v19  ;;  %v624_v28 = vand.u32 2147483647, %v614_v19  ;;  %vm620_vm9 = vweird.f32 %v614_v19 }
0x1472   : > { %v627_v31 = vor.u32 1.1754944e-38, %v626_v25  ;;  %vm625_vm11 = vcmp.eq.f32.partialorder %v624_v28, 8.507059e+37 }
0x1476   : > { %v794_v20 = vpop.eup %793 }
0x1477   : > { %v616_v21 = vmul.f32 %v794_v20, %v614_v19  ;;  %vm621_vm8 = vweird.f32 %v794_v20 }
0x1478   : > { %vm622_vm10 = vmor %vm620_vm9, %vm621_vm8 }
0x1479   : > { %v617_v22 = vsub.f32 1.0, %v616_v21 }
0x147a   : > { %v595_v24 = vpop.xlane.xlu1 %594 }
0x147b   : > { %v596_v26 = vadd.f32 %v595_v24, %v1137_v29  ;;  %v618_v27 = vmul.f32 %v794_v20, %v617_v22 }
0x147d   : > { %642 = vperm.xlu0 %788, %v596_v26   ;;  %v619_v30 = vadd.f32 %v794_v20, %v618_v27 }
0x147f   : > { %v623_v32 = vsel %vm622_vm10, %v794_v20, %v619_v30 }
0x1480   : > { %v628_v33 = vsel %vm625_vm11, %v627_v31, %v623_v32 }
0x1481   : > { %648 = vperm.xlu1 %789, %v628_v33  }
0x1485   : > { %790 = vset.pattern.permute.xlu0 %v1017_v14 }
0x14ef   : > { %v643_v34 = vpop.permute.xlu0 %642 }
0x14f0   : > { %v645_v35 = vsel %vm1195_vm5, %v643_v34, %v995_v12  }
0x14f1   : > { %v1265_v12 = vmov %v645_v35  ;;  %96 = sbr.rel (!%p94_p0) target bundleno = 26 (0x1a), region = 75  ;;  %655 = vst.msk [vmem:[#allocation11] sm:$0xf] (%p94_p0), %vm104_vm6, %v645_v35 }
0x14f2   :  { %678 = dma.vmem_to_hbm [thread:$0]  (%p94_p0), %s674_s24, 64, %s676_s22, [#allocation12]  }
0x14f3   : > { %v649_v36 = vpop.permute.xlu1 %648 }
0x14f4   : > { %v651_v29 = vsel %vm1195_vm5, %v649_v36, %v991_v11  }
0x14f5   : > { %v1264_v11 = vmov %v651_v29  ;;  %656 = vst.msk [vmem:[#allocation13] sm:$0xf] (%p94_p0), %vm104_vm6, %v651_v29 }
0x14f6   :  { %689 = dma.vmem_to_hbm [thread:$0]  %s685_s9, 64, %s687_s5, [#allocation12]  }
0x14f7   :  { %985 = dma.done.wait [#allocation4], 64  }
0x14f8   :  { %986 = vsyncadd [#allocation4], 4294967232 }
0x14f9   :  { %987 = dma.done.wait [#allocation12], 128  }
0x14fa   :  { %988 = vsyncadd [#allocation12], 4294967168 }
0x14fb   :  { %702 = vsyncpa [#allocation3], 1 }
0x14fc   :  { %703 = vsyncpa [#allocation6], 1 }
0x14fd   :  { %704 = vsyncpa [#allocation9], 1 }
0x14fe   :  { %705 = vsyncpa [#allocation4], 1 }
0x14ff   :  { %706 = vsyncpa [#allocation12], 1 }

</bundles_post_ra>
